<compile_context>
chip_gen: v7x
topology: tpu7x:2x2x1
jax: 0.10.0
libtpu: 0.0.40
codegen_flags: <defaults>
</compile_context>

<pallas_src>
import functools

import jax
import jax.numpy as jnp
from jax.experimental import pallas as pl
from jax.experimental.pallas import tpu as pltpu


def _acc_add(acc_ref, vals):
    """Accumulate a (r, 128) f32 tile into an (8, 128) VMEM accumulator.

    Bulk path: layout-free (r//8, 8, 128) reshape + sum (pure VPU adds).
    Remainder / tiny-tile path: sublane reduce added into row 0.
    """
    r = vals.shape[0]
    r8 = (r // 8) * 8
    if r8 > 0:
        acc_ref[...] += vals[:r8].reshape(r8 // 8, 8, 128).sum(axis=0)
    if r8 < r:
        rem = jnp.sum(vals[r8:], axis=0, keepdims=True)          # (1, 128)
        acc_ref[0:1, :] = acc_ref[0:1, :] + rem


def _focal_kernel(conf_ref, y_ref, loc_ref, gt_ref, pos_ref, out_ref,
                  sl1_acc, bce_acc, pos_acc, *,
                  alpha, gamma, n_anchors, num_classes, c_pad, tile_anchors):
    c = pl.program_id(0)
    i = pl.program_id(1)
    steps = pl.num_programs(1)

    @pl.when(i == 0)
    def _():
        sl1_acc[...] = jnp.zeros_like(sl1_acc)
        bce_acc[...] = jnp.zeros_like(bce_acc)
        pos_acc[...] = jnp.zeros_like(pos_acc)

    # First anchor of this *logical* tile.  Uses the UNclamped step index, so the
    # clamped duplicate trailing blocks / partial-overhang rows get anchor ids
    # >= n_anchors and are masked out before accumulation.
    a0 = (c * steps + i) * tile_anchors

    # ---------- classification: lane-dense conf layout (c_pad lanes per anchor) ------
    rc = conf_ref.shape[0]
    cls_shift = c_pad.bit_length() - 1                 # log2(c_pad), python int
    anchors_per_row = 128 // c_pad
    lane = jax.lax.broadcasted_iota(jnp.int32, (rc, 128), 1)
    row = jax.lax.broadcasted_iota(jnp.int32, (rc, 128), 0)
    cls_id = lane & (c_pad - 1)                        # class index within anchor
    anchor_c = a0 + row * anchors_per_row + (lane >> cls_shift)
    fg_valid = jnp.logical_and(
        jnp.logical_and(cls_id >= 1, cls_id <= num_classes - 1),
        anchor_c < n_anchors)

    x = conf_ref[...].astype(jnp.float32)              # logits (bg + fg + pad lanes)
    y = y_ref[...].astype(jnp.float32)                 # lane-aligned one-hot target

    # log(sigmoid(x)) = -softplus(-x), log(1-sigmoid(x)) = -softplus(x); both share
    # log(1 + exp(-|x|)).  sigmoid comes from the same exp via an approx reciprocal
    # (2 EUP ops / element instead of 3).  Logs clamped at -100 like torch BCELoss.
    e = jnp.exp(-jnp.abs(x))
    log1pe = jnp.log(1.0 + e)
    sp_pos = jnp.maximum(x, 0.0) + log1pe              # softplus(x)  = -log(1-p)
    sp_neg = jnp.maximum(-x, 0.0) + log1pe             # softplus(-x) = -log(p)
    logp = jnp.maximum(-sp_neg, -100.0)
    log1mp = jnp.maximum(-sp_pos, -100.0)
    r = pl.reciprocal(1.0 + e, approx=True)
    p = jnp.where(x >= 0.0, r, e * r)                  # sigmoid(x)

    alpha_factor = alpha * y + (1.0 - alpha) * (1.0 - y)
    # NOTE: matches the PyTorch module verbatim (1 - p*y + p*(1-y) == 1+p for y=0).
    focal_weight = 1.0 - p * y + p * (1.0 - y)
    if gamma == 2.0:
        fw = focal_weight * focal_weight
    elif gamma == 1.0:
        fw = focal_weight
    else:
        fw = jnp.power(focal_weight, gamma)
    bce = -(alpha_factor * fw) * (y * logp + (1.0 - y) * log1mp)
    bce = jnp.where(fg_valid, bce, 0.0)                # NaN/garbage-safe masking
    _acc_add(bce_acc, bce)

    # ---------- smooth L1: lane-dense loc layout (4 lanes per anchor) ----------------
    rl = loc_ref.shape[0]
    lane_l = jax.lax.broadcasted_iota(jnp.int32, (rl, 128), 1)
    row_l = jax.lax.broadcasted_iota(jnp.int32, (rl, 128), 0)
    anchor_l = a0 + row_l * 32 + (lane_l >> 2)
    posb = jnp.logical_and(anchor_l < n_anchors,
                           pos_ref[...].astype(jnp.float32) > 0.5)

    d = loc_ref[...].astype(jnp.float32) - gt_ref[...].astype(jnp.float32)
    ad = jnp.abs(d)
    sl1 = jnp.where(ad < 1.0, 0.5 * d * d, ad - 0.5)
    _acc_add(sl1_acc, jnp.where(posb, sl1, 0.0))       # NaN-safe (select, not multiply)
    _acc_add(pos_acc, jnp.where(posb, 1.0, 0.0))

    # ---------- final cross-lane reduce + lane-dense (1,128) store, once per core ----
    @pl.when(i == steps - 1)
    def _():
        sl1_t = jnp.sum(sl1_acc[...])
        bce_t = jnp.sum(bce_acc[...])
        pos_t = jnp.sum(pos_acc[...]) * 0.25           # each anchor counted on 4 lanes
        lane_o = jax.lax.broadcasted_iota(jnp.int32, (1, 128), 1)
        out_ref[...] = jnp.where(
            lane_o == 0, sl1_t,
            jnp.where(lane_o == 1, bce_t,
                      jnp.where(lane_o == 2, pos_t, 0.0)))


def _next_pow2(n):
    p = 1
    while p < n:
        p *= 2
    return p


def _device_kind():
    try:
        return jax.devices()[0].device_kind.lower()
    except Exception:
        return ""


def focal_loss(confidence, predicted_locations, gt_locations, labels,
               alpha=0.25, gamma=2.0, tile_anchors=None, num_core_splits=None):
    """Returns (smooth_l1_loss, classification_loss), both scalars.

    confidence:          (B, A, C) class logits (class 0 = background)
    predicted_locations: (B, A, 4)
    gt_locations:        (B, A, 4) matched gt boxes (from anchor matching)
    labels:              (B, A)    matched labels   (from anchor matching)
    """
    B, A, C = confidence.shape
    N = B * A
    if C > 128:
        # TODO(synk): C > 128 would need multi-row class packing per anchor.
        raise NotImplementedError("focal_loss kernel supports at most 128 classes")

    c_pad = _next_pow2(C)              # power of two -> divides 128, lanes pack cleanly
    r_c = 128 // c_pad                 # anchors per packed conf row
    row_align = max(32, r_c)           # packed loc rows hold 32 anchors each
    n_al = ((N + row_align - 1) // row_align) * row_align

    conf2 = confidence.reshape(N, C)
    lab = labels.reshape(N).astype(jnp.int32)
    cls_ids = jnp.arange(c_pad, dtype=jnp.int32)
    onehot = jnp.logical_and(lab[:, None] == cls_ids[None, :],
                             lab[:, None] > 0).astype(jnp.int8)        # (N, c_pad)
    loc2 = predicted_locations.reshape(N, 4)
    gtl2 = gt_locations.reshape(N, 4)
    pos4 = jnp.broadcast_to((lab > 0)[:, None], (N, 4)).astype(jnp.int8)

    if c_pad != C:                     # pad classes; masked in-kernel as non-foreground
        conf2 = jnp.pad(conf2, ((0, 0), (0, c_pad - C)))
    if n_al != N:                      # pad anchors; masked in-kernel via anchor id
        conf2 = jnp.pad(conf2, ((0, n_al - N), (0, 0)))
        onehot = jnp.pad(onehot, ((0, n_al - N), (0, 0)))
        loc2 = jnp.pad(loc2, ((0, n_al - N), (0, 0)))
        gtl2 = jnp.pad(gtl2, ((0, n_al - N), (0, 0)))
        pos4 = jnp.pad(pos4, ((0, n_al - N), (0, 0)))

    g_c = n_al * c_pad // 128          # packed conf rows
    g_l = n_al // 32                   # packed loc rows
    conf_p = conf2.reshape(g_c, 128)   # lane-dense repack: free row-major reshapes
    y_p = onehot.reshape(g_c, 128)
    loc_p = loc2.reshape(g_l, 128)
    gtl_p = gtl2.reshape(g_l, 128)
    pos_p = pos4.reshape(g_l, 128)

    kind = _device_kind()
    is_v7 = ("v7" in kind) or ("7x" in kind)
    if num_core_splits is None:
        # 2 TensorCores per chip on v7x / v4 / v5p; single TC on v5e / v6e.
        num_core_splits = 2 if (is_v7 or "v4" in kind or "v5p" in kind) else 1

    # Block sublane dims stay multiples of 32 (safe for int8/bf16/f32 native tilings)
    # unless the whole (tiny) array fits in one full-dims block.
    step_align = max(4096 // c_pad, 1024)

    conf_isz = confidence.dtype.itemsize
    loc_isz = predicted_locations.dtype.itemsize
    gtl_isz = gt_locations.dtype.itemsize
    # Crude per-anchor VMEM model: double-buffered inputs + f32 elementwise temporaries.
    per_anchor = (2 * (c_pad * (conf_isz + 1) + 4 * (loc_isz + gtl_isz + 1))
                  + 12 * c_pad * 4 + 8 * 4 * 4)
    budget = (8 << 20) if is_v7 else (16 << 20)   # v7x: 64 MiB VMEM; v5e/v6e: 128 MiB

    if n_al <= step_align:
        tile = n_al                    # tiny input: one step, full-dims blocks
        nb = 1
        rc, rl = g_c, g_l
        num_core_splits = 1
    else:
        tile = (budget // per_anchor) if tile_anchors is None else int(tile_anchors)
        tile = max(step_align, (tile // step_align) * step_align)
        tile = min(tile, (n_al // step_align) * step_align)
        nb = pl.cdiv(n_al, tile)
        rc = tile * c_pad // 128
        rl = tile // 32

    splits = max(1, min(int(num_core_splits), nb))
    steps = pl.cdiv(nb, splits)

    def row_block(c, i):
        # Clamp so duplicated trailing steps re-read a real block; the kernel masks
        # them out via the (unclamped) anchor-id test.
        return (jnp.minimum(c * steps + i, nb - 1), 0)

    vmem_limit = (32 << 20) if is_v7 else (64 << 20)

    kernel = functools.partial(
        _focal_kernel, alpha=float(alpha), gamma=float(gamma),
        n_anchors=N, num_classes=C, c_pad=c_pad, tile_anchors=tile)

    out = pl.pallas_call(
        kernel,
        out_shape=jax.ShapeDtypeStruct((splits, 128), jnp.float32),
        grid_spec=pltpu.PrefetchScalarGridSpec(
            num_scalar_prefetch=0,
            grid=(splits, steps),
            in_specs=[
                pl.BlockSpec((rc, 128), row_block),   # packed logits
                pl.BlockSpec((rc, 128), row_block),   # packed one-hot targets (int8)
                pl.BlockSpec((rl, 128), row_block),   # packed predicted locations
                pl.BlockSpec((rl, 128), row_block),   # packed gt locations
                pl.BlockSpec((rl, 128), row_block),   # packed positive mask (int8)
            ],
            out_specs=pl.BlockSpec((1, 128), lambda c, i: (c, 0)),
            scratch_shapes=[
                pltpu.VMEM((8, 128), jnp.float32),    # smooth-L1 partials
                pltpu.VMEM((8, 128), jnp.float32),    # focal-BCE partials
                pltpu.VMEM((8, 128), jnp.float32),    # positive-count partials
            ],
        ),
        compiler_params=pltpu.CompilerParams(
            dimension_semantics=("parallel", "arbitrary"),
            vmem_limit_bytes=vmem_limit),
    )(conf_p, y_p, loc_p, gtl_p, pos_p)

    totals = jnp.sum(out, axis=0)                     # reduce per-core partials
    num_pos = totals[2]
    # NOTE: num_pos intentionally unclamped (0 positives -> inf/nan), matching PyTorch.
    return totals[0] / num_pos, totals[1] / num_pos


def focal_loss_ref(confidence, predicted_locations, gt_locations, labels,
                   alpha=0.25, gamma=2.0):
    """Pure-JAX reference, faithful to the PyTorch math (sigmoid + clamped logs)."""
    B, A, C = confidence.shape
    N = B * A
    conf = confidence.reshape(N, C).astype(jnp.float32)
    loc = predicted_locations.reshape(N, 4).astype(jnp.float32)
    gtl = gt_locations.reshape(N, 4).astype(jnp.float32)
    lab = labels.reshape(N).astype(jnp.int32)

    posf = (lab > 0).astype(jnp.float32)
    num_pos = jnp.sum(posf)

    d = loc - gtl
    ad = jnp.abs(d)
    sl1 = jnp.where(ad < 1.0, 0.5 * d * d, ad - 0.5)
    sl1_loss = jnp.sum(sl1 * posf[:, None]) / num_pos

    p = jax.nn.sigmoid(conf)[:, 1:]
    n_cls = p.shape[1]
    ids = jnp.arange(n_cls)[None, :]
    y = jnp.where((lab[:, None] - 1) == ids, 1.0, 0.0) * posf[:, None]
    alpha_factor = alpha * y + (1.0 - alpha) * (1.0 - y)
    focal_weight = 1.0 - p * y + p * (1.0 - y)
    weight = alpha_factor * jnp.power(focal_weight, gamma)
    logp = jnp.maximum(jnp.log(p), -100.0)
    log1mp = jnp.maximum(jnp.log(1.0 - p), -100.0)
    bce = -weight * (y * logp + (1.0 - y) * log1mp)
    cls_loss = jnp.sum(bce) / num_pos
    return sl1_loss, cls_loss


if __name__ == "__main__":
    B, A, C = 2, 16, 4   # batch, num_anchors, num_classes (incl. background)
    key = jax.random.PRNGKey(0)
    k1, k2, k3, k4 = jax.random.split(key, 4)

    confidence = jax.random.normal(k1, (B, A, C), dtype=jnp.float32)
    predicted_locations = jax.random.normal(k2, (B, A, 4), dtype=jnp.float32)
    gt_locations = jax.random.normal(k3, (B, A, 4), dtype=jnp.float32)
    # labels in [0, C); 0 = background.  Seeded -> deterministic, has positives.
    labels = jax.random.randint(k4, (B, A), 0, C, dtype=jnp.int32)

    sl1, cls = focal_loss(confidence, predicted_locations, gt_locations, labels)
    sl1 = jax.block_until_ready(sl1)
    cls = jax.block_until_ready(cls)

    sl1_r, cls_r = focal_loss_ref(confidence, predicted_locations, gt_locations, labels)
    # 2e-3 tolerance: the in-kernel sigmoid uses the EUP's approx reciprocal.
    assert jnp.allclose(sl1, sl1_r, rtol=2e-3, atol=2e-3), (sl1, sl1_r)
    assert jnp.allclose(cls, cls_r, rtol=2e-3, atol=2e-3), (cls, cls_r)

    print("KERNEL_OK")
</pallas_src>

<mosaic_0001>
module attributes {stable_mosaic.version = 11 : i64} {
  func.func @_focal_kernel(%arg0: i32, %arg1: i32, %arg2: memref<1x128xf32, #tpu.memory_space<vmem>>, %arg3: memref<1x128xi8, #tpu.memory_space<vmem>>, %arg4: memref<1x128xf32, #tpu.memory_space<vmem>>, %arg5: memref<1x128xf32, #tpu.memory_space<vmem>>, %arg6: memref<1x128xi8, #tpu.memory_space<vmem>>, %arg7: memref<1x128xf32, #tpu.memory_space<vmem>>, %arg8: memref<8x128xf32, #tpu.memory_space<vmem>>, %arg9: memref<8x128xf32, #tpu.memory_space<vmem>>, %arg10: memref<8x128xf32, #tpu.memory_space<vmem>>) attributes {dimension_semantics = [#tpu.dimension_semantics<parallel>, #tpu.dimension_semantics<arbitrary>], iteration_bounds = array<i64: 1, 1>, scalar_prefetch = 0 : i64, scratch_operands = 3 : i64, tpu.core_type = #tpu.core_type<tc>, window_params = [{transform_indices = @transform_0, window_bounds = array<i64: 1, 128>}, {transform_indices = @transform_1, window_bounds = array<i64: 1, 128>}, {transform_indices = @transform_2, window_bounds = array<i64: 1, 128>}, {transform_indices = @transform_3, window_bounds = array<i64: 1, 128>}, {transform_indices = @transform_4, window_bounds = array<i64: 1, 128>}, {transform_indices = @transform_5, window_bounds = array<i64: 1, 128>}]} {
    %c0_i32 = arith.constant 0 : i32
    %0 = arith.cmpi eq, %arg1, %c0_i32 : i32
    %1 = arith.extui %0 : i1 to i32
    %c0_i32_0 = arith.constant 0 : i32
    %2 = arith.cmpi ne, %1, %c0_i32_0 : i32
    scf.if %2 {
      %cst_59 = arith.constant 0.000000e+00 : f32
      %135 = vector.broadcast %cst_59 : f32 to vector<8x128xf32>
      %c0_60 = arith.constant 0 : index
      %c0_61 = arith.constant 0 : index
      %136 = vector.load %arg8[%c0_60, %c0_61] : memref<8x128xf32, #tpu.memory_space<vmem>>, vector<8x128xf32>
      tpu.vector_store %arg8[%c0_60, %c0_61], %135 {strides = array<i32>} : memref<8x128xf32, #tpu.memory_space<vmem>>, vector<8x128xf32>,
      %cst_62 = arith.constant 0.000000e+00 : f32
      %137 = vector.broadcast %cst_62 : f32 to vector<8x128xf32>
      %c0_63 = arith.constant 0 : index
      %c0_64 = arith.constant 0 : index
      %138 = vector.load %arg9[%c0_63, %c0_64] : memref<8x128xf32, #tpu.memory_space<vmem>>, vector<8x128xf32>
      tpu.vector_store %arg9[%c0_63, %c0_64], %137 {strides = array<i32>} : memref<8x128xf32, #tpu.memory_space<vmem>>, vector<8x128xf32>,
      %cst_65 = arith.constant 0.000000e+00 : f32
      %139 = vector.broadcast %cst_65 : f32 to vector<8x128xf32>
      %c0_66 = arith.constant 0 : index
      %c0_67 = arith.constant 0 : index
      %140 = vector.load %arg10[%c0_66, %c0_67] : memref<8x128xf32, #tpu.memory_space<vmem>>, vector<8x128xf32>
      tpu.vector_store %arg10[%c0_66, %c0_67], %139 {strides = array<i32>} : memref<8x128xf32, #tpu.memory_space<vmem>>, vector<8x128xf32>,
    } else {
    }
    %c1_i32 = arith.constant 1 : i32
    %3 = arith.muli %arg0, %c1_i32 : i32
    %4 = arith.addi %3, %arg1 : i32
    %c32_i32 = arith.constant 32 : i32
    %5 = arith.muli %4, %c32_i32 : i32
    %6 = tpu.iota {dimensions = array<i32: 1>} : vector<1x128xi32>
    %7 = tpu.iota {dimensions = array<i32: 0>} : vector<1x128xi32>
    %c3_i32 = arith.constant 3 : i32
    %8 = vector.broadcast %c3_i32 : i32 to vector<1x128xi32>
    %9 = arith.andi %6, %8 : vector<1x128xi32>
    %c32_i32_1 = arith.constant 32 : i32
    %10 = vector.broadcast %c32_i32_1 : i32 to vector<1x128xi32>
    %11 = arith.muli %7, %10 : vector<1x128xi32>
    %12 = vector.broadcast %5 : i32 to vector<1x128xi32>
    %13 = arith.addi %12, %11 : vector<1x128xi32>
    %c2_i32 = arith.constant 2 : i32
    %14 = vector.broadcast %c2_i32 : i32 to vector<1x128xi32>
    %15 = arith.shrsi %6, %14 : vector<1x128xi32>
    %16 = arith.addi %13, %15 : vector<1x128xi32>
    %c1_i32_2 = arith.constant 1 : i32
    %17 = vector.broadcast %c1_i32_2 : i32 to vector<1x128xi32>
    %18 = arith.cmpi sge, %9, %17 : vector<1x128xi32>
    %c3_i32_3 = arith.constant 3 : i32
    %19 = vector.broadcast %c3_i32_3 : i32 to vector<1x128xi32>
    %20 = arith.cmpi sle, %9, %19 : vector<1x128xi32>
    %21 = arith.andi %18, %20 : vector<1x128xi1>
    %c32_i32_4 = arith.constant 32 : i32
    %22 = vector.broadcast %c32_i32_4 : i32 to vector<1x128xi32>
    %23 = arith.cmpi slt, %16, %22 : vector<1x128xi32>
    %24 = arith.andi %21, %23 : vector<1x128xi1>
    %c0 = arith.constant 0 : index
    %c0_5 = arith.constant 0 : index
    %25 = vector.load %arg2[%c0, %c0_5] : memref<1x128xf32, #tpu.memory_space<vmem>>, vector<1x128xf32>
    %c0_6 = arith.constant 0 : index
    %c0_7 = arith.constant 0 : index
    %26 = vector.load %arg3[%c0_6, %c0_7] : memref<1x128xi8, #tpu.memory_space<vmem>>, vector<1x128xi8>
    %27 = arith.sitofp %26 : vector<1x128xi8> to vector<1x128xf32>
    %28 = math.absf %25 : vector<1x128xf32>
    %cst = arith.constant 0.000000e+00 : f32
    %29 = vector.broadcast %cst : f32 to vector<1x128xf32>
    %30 = arith.subf %29, %28 : vector<1x128xf32>
    %31 = math.exp %30 : vector<1x128xf32>
    %cst_8 = arith.constant 1.000000e+00 : f32
    %32 = vector.broadcast %cst_8 : f32 to vector<1x128xf32>
    %33 = arith.addf %32, %31 : vector<1x128xf32>
    %34 = math.log %33 : vector<1x128xf32>
    %cst_9 = arith.constant 0.000000e+00 : f32
    %35 = vector.broadcast %cst_9 : f32 to vector<1x128xf32>
    %36 = arith.maximumf %25, %35 : vector<1x128xf32>
    %37 = arith.addf %36, %34 : vector<1x128xf32>
    %cst_10 = arith.constant 0.000000e+00 : f32
    %38 = vector.broadcast %cst_10 : f32 to vector<1x128xf32>
    %39 = arith.subf %38, %25 : vector<1x128xf32>
    %cst_11 = arith.constant 0.000000e+00 : f32
    %40 = vector.broadcast %cst_11 : f32 to vector<1x128xf32>
    %41 = arith.maximumf %39, %40 : vector<1x128xf32>
    %42 = arith.addf %41, %34 : vector<1x128xf32>
    %cst_12 = arith.constant 0.000000e+00 : f32
    %43 = vector.broadcast %cst_12 : f32 to vector<1x128xf32>
    %44 = arith.subf %43, %42 : vector<1x128xf32>
    %cst_13 = arith.constant -1.000000e+02 : f32
    %45 = vector.broadcast %cst_13 : f32 to vector<1x128xf32>
    %46 = arith.maximumf %44, %45 : vector<1x128xf32>
    %cst_14 = arith.constant 0.000000e+00 : f32
    %47 = vector.broadcast %cst_14 : f32 to vector<1x128xf32>
    %48 = arith.subf %47, %37 : vector<1x128xf32>
    %cst_15 = arith.constant -1.000000e+02 : f32
    %49 = vector.broadcast %cst_15 : f32 to vector<1x128xf32>
    %50 = arith.maximumf %48, %49 : vector<1x128xf32>
    %cst_16 = arith.constant 1.000000e+00 : f32
    %51 = vector.broadcast %cst_16 : f32 to vector<1x128xf32>
    %52 = arith.addf %51, %31 : vector<1x128xf32>
    %53 = tpu.reciprocal %52 {approx = true} : vector<1x128xf32> -> vector<1x128xf32>
    %cst_17 = arith.constant 0.000000e+00 : f32
    %54 = vector.broadcast %cst_17 : f32 to vector<1x128xf32>
    %55 = arith.cmpf oge, %25, %54 : vector<1x128xf32>
    %56 = arith.mulf %31, %53 : vector<1x128xf32>
    %57 = arith.select %55, %53, %56 : vector<1x128xi1>, vector<1x128xf32>
    %cst_18 = arith.constant 2.500000e-01 : f32
    %58 = vector.broadcast %cst_18 : f32 to vector<1x128xf32>
    %59 = arith.mulf %58, %27 : vector<1x128xf32>
    %cst_19 = arith.constant 1.000000e+00 : f32
    %60 = vector.broadcast %cst_19 : f32 to vector<1x128xf32>
    %61 = arith.subf %60, %27 : vector<1x128xf32>
    %cst_20 = arith.constant 7.500000e-01 : f32
    %62 = vector.broadcast %cst_20 : f32 to vector<1x128xf32>
    %63 = arith.mulf %62, %61 : vector<1x128xf32>
    %64 = arith.addf %59, %63 : vector<1x128xf32>
    %65 = arith.mulf %57, %27 : vector<1x128xf32>
    %cst_21 = arith.constant 1.000000e+00 : f32
    %66 = vector.broadcast %cst_21 : f32 to vector<1x128xf32>
    %67 = arith.subf %66, %65 : vector<1x128xf32>
    %cst_22 = arith.constant 1.000000e+00 : f32
    %68 = vector.broadcast %cst_22 : f32 to vector<1x128xf32>
    %69 = arith.subf %68, %27 : vector<1x128xf32>
    %70 = arith.mulf %57, %69 : vector<1x128xf32>
    %71 = arith.addf %67, %70 : vector<1x128xf32>
    %72 = arith.mulf %71, %71 : vector<1x128xf32>
    %73 = arith.mulf %64, %72 : vector<1x128xf32>
    %cst_23 = arith.constant 0.000000e+00 : f32
    %74 = vector.broadcast %cst_23 : f32 to vector<1x128xf32>
    %75 = arith.subf %74, %73 : vector<1x128xf32>
    %76 = arith.mulf %27, %46 : vector<1x128xf32>
    %cst_24 = arith.constant 1.000000e+00 : f32
    %77 = vector.broadcast %cst_24 : f32 to vector<1x128xf32>
    %78 = arith.subf %77, %27 : vector<1x128xf32>
    %79 = arith.mulf %78, %50 : vector<1x128xf32>
    %80 = arith.addf %76, %79 : vector<1x128xf32>
    %81 = arith.mulf %75, %80 : vector<1x128xf32>
    %cst_25 = arith.constant 0.000000e+00 : f32
    %82 = vector.broadcast %cst_25 : f32 to vector<1x128xf32>
    %83 = arith.select %24, %81, %82 : vector<1x128xi1>, vector<1x128xf32>
    %cst_26 = arith.constant dense<0.000000e+00> : vector<128xf32>
    %84 = vector.multi_reduction <add>, %83, %cst_26 [0] : vector<1x128xf32> to vector<128xf32>
    %85 = vector.shape_cast %84 : vector<128xf32> to vector<1x128xf32>
    %c0_27 = arith.constant 0 : index
    %c0_28 = arith.constant 0 : index
    %86 = vector.load %arg9[%c0_27, %c0_28] : memref<8x128xf32, #tpu.memory_space<vmem>>, vector<1x128xf32>
    %87 = arith.addf %86, %85 : vector<1x128xf32>
    %c0_29 = arith.constant 0 : index
    %c0_30 = arith.constant 0 : index
    %88 = vector.load %arg9[%c0_29, %c0_30] : memref<8x128xf32, #tpu.memory_space<vmem>>, vector<1x128xf32>
    tpu.vector_store %arg9[%c0_29, %c0_30], %87 {strides = array<i32>} : memref<8x128xf32, #tpu.memory_space<vmem>>, vector<1x128xf32>,
    %89 = tpu.iota {dimensions = array<i32: 1>} : vector<1x128xi32>
    %90 = tpu.iota {dimensions = array<i32: 0>} : vector<1x128xi32>
    %c32_i32_31 = arith.constant 32 : i32
    %91 = vector.broadcast %c32_i32_31 : i32 to vector<1x128xi32>
    %92 = arith.muli %90, %91 : vector<1x128xi32>
    %93 = vector.broadcast %5 : i32 to vector<1x128xi32>
    %94 = arith.addi %93, %92 : vector<1x128xi32>
    %c2_i32_32 = arith.constant 2 : i32
    %95 = vector.broadcast %c2_i32_32 : i32 to vector<1x128xi32>
    %96 = arith.shrsi %89, %95 : vector<1x128xi32>
    %97 = arith.addi %94, %96 : vector<1x128xi32>
    %c32_i32_33 = arith.constant 32 : i32
    %98 = vector.broadcast %c32_i32_33 : i32 to vector<1x128xi32>
    %99 = arith.cmpi slt, %97, %98 : vector<1x128xi32>
    %c0_34 = arith.constant 0 : index
    %c0_35 = arith.constant 0 : index
    %100 = vector.load %arg6[%c0_34, %c0_35] : memref<1x128xi8, #tpu.memory_space<vmem>>, vector<1x128xi8>
    %101 = arith.sitofp %100 : vector<1x128xi8> to vector<1x128xf32>
    %cst_36 = arith.constant 5.000000e-01 : f32
    %102 = vector.broadcast %cst_36 : f32 to vector<1x128xf32>
    %103 = arith.cmpf ogt, %101, %102 : vector<1x128xf32>
    %104 = arith.andi %99, %103 : vector<1x128xi1>
    %c0_37 = arith.constant 0 : index
    %c0_38 = arith.constant 0 : index
    %105 = vector.load %arg4[%c0_37, %c0_38] : memref<1x128xf32, #tpu.memory_space<vmem>>, vector<1x128xf32>
    %c0_39 = arith.constant 0 : index
    %c0_40 = arith.constant 0 : index
    %106 = vector.load %arg5[%c0_39, %c0_40] : memref<1x128xf32, #tpu.memory_space<vmem>>, vector<1x128xf32>
    %107 = arith.subf %105, %106 : vector<1x128xf32>
    %108 = math.absf %107 : vector<1x128xf32>
    %cst_41 = arith.constant 1.000000e+00 : f32
    %109 = vector.broadcast %cst_41 : f32 to vector<1x128xf32>
    %110 = arith.cmpf olt, %108, %109 : vector<1x128xf32>
    %cst_42 = arith.constant 5.000000e-01 : f32
    %111 = vector.broadcast %cst_42 : f32 to vector<1x128xf32>
    %112 = arith.mulf %111, %107 : vector<1x128xf32>
    %113 = arith.mulf %112, %107 : vector<1x128xf32>
    %cst_43 = arith.constant 5.000000e-01 : f32
    %114 = vector.broadcast %cst_43 : f32 to vector<1x128xf32>
    %115 = arith.subf %108, %114 : vector<1x128xf32>
    %116 = arith.select %110, %113, %115 : vector<1x128xi1>, vector<1x128xf32>
    %cst_44 = arith.constant 0.000000e+00 : f32
    %117 = vector.broadcast %cst_44 : f32 to vector<1x128xf32>
    %118 = arith.select %104, %116, %117 : vector<1x128xi1>, vector<1x128xf32>
    %cst_45 = arith.constant dense<0.000000e+00> : vector<128xf32>
    %119 = vector.multi_reduction <add>, %118, %cst_45 [0] : vector<1x128xf32> to vector<128xf32>
    %120 = vector.shape_cast %119 : vector<128xf32> to vector<1x128xf32>
    %c0_46 = arith.constant 0 : index
    %c0_47 = arith.constant 0 : index
    %121 = vector.load %arg8[%c0_46, %c0_47] : memref<8x128xf32, #tpu.memory_space<vmem>>, vector<1x128xf32>
    %122 = arith.addf %121, %120 : vector<1x128xf32>
    %c0_48 = arith.constant 0 : index
    %c0_49 = arith.constant 0 : index
    %123 = vector.load %arg8[%c0_48, %c0_49] : memref<8x128xf32, #tpu.memory_space<vmem>>, vector<1x128xf32>
    tpu.vector_store %arg8[%c0_48, %c0_49], %122 {strides = array<i32>} : memref<8x128xf32, #tpu.memory_space<vmem>>, vector<1x128xf32>,
    %cst_50 = arith.constant 1.000000e+00 : f32
    %cst_51 = arith.constant 0.000000e+00 : f32
    %124 = vector.broadcast %cst_50 : f32 to vector<1x128xf32>
    %125 = vector.broadcast %cst_51 : f32 to vector<1x128xf32>
    %126 = arith.select %104, %124, %125 : vector<1x128xi1>, vector<1x128xf32>
    %cst_52 = arith.constant dense<0.000000e+00> : vector<128xf32>
    %127 = vector.multi_reduction <add>, %126, %cst_52 [0] : vector<1x128xf32> to vector<128xf32>
    %128 = vector.shape_cast %127 : vector<128xf32> to vector<1x128xf32>
    %c0_53 = arith.constant 0 : index
    %c0_54 = arith.constant 0 : index
    %129 = vector.load %arg10[%c0_53, %c0_54] : memref<8x128xf32, #tpu.memory_space<vmem>>, vector<1x128xf32>
    %130 = arith.addf %129, %128 : vector<1x128xf32>
    %c0_55 = arith.constant 0 : index
    %c0_56 = arith.constant 0 : index
    %131 = vector.load %arg10[%c0_55, %c0_56] : memref<8x128xf32, #tpu.memory_space<vmem>>, vector<1x128xf32>
    tpu.vector_store %arg10[%c0_55, %c0_56], %130 {strides = array<i32>} : memref<8x128xf32, #tpu.memory_space<vmem>>, vector<1x128xf32>,
    %c0_i32_57 = arith.constant 0 : i32
    %132 = arith.cmpi eq, %arg1, %c0_i32_57 : i32
    %133 = arith.extui %132 : i1 to i32
    %c0_i32_58 = arith.constant 0 : i32
    %134 = arith.cmpi ne, %133, %c0_i32_58 : i32
    scf.if %134 {
      %c0_59 = arith.constant 0 : index
      %c0_60 = arith.constant 0 : index
      %135 = vector.load %arg8[%c0_59, %c0_60] : memref<8x128xf32, #tpu.memory_space<vmem>>, vector<8x128xf32>
      %136 = vector.shape_cast %135 : vector<8x128xf32> to vector<1x8x128xf32>
      %cst_61 = arith.constant dense<0.000000e+00> : vector<1xf32>
      %137 = vector.multi_reduction <add>, %136, %cst_61 [1, 2] : vector<1x8x128xf32> to vector<1xf32>
      %138 = vector.shape_cast %137 : vector<1xf32> to vector<1x1x1xf32>
      %139 = vector.extract %138[0, 0, 0] : f32 from vector<1x1x1xf32>
      %c0_62 = arith.constant 0 : index
      %c0_63 = arith.constant 0 : index
      %140 = vector.load %arg9[%c0_62, %c0_63] : memref<8x128xf32, #tpu.memory_space<vmem>>, vector<8x128xf32>
      %141 = vector.shape_cast %140 : vector<8x128xf32> to vector<1x8x128xf32>
      %cst_64 = arith.constant dense<0.000000e+00> : vector<1xf32>
      %142 = vector.multi_reduction <add>, %141, %cst_64 [1, 2] : vector<1x8x128xf32> to vector<1xf32>
      %143 = vector.shape_cast %142 : vector<1xf32> to vector<1x1x1xf32>
      %144 = vector.extract %143[0, 0, 0] : f32 from vector<1x1x1xf32>
      %c0_65 = arith.constant 0 : index
      %c0_66 = arith.constant 0 : index
      %145 = vector.load %arg10[%c0_65, %c0_66] : memref<8x128xf32, #tpu.memory_space<vmem>>, vector<8x128xf32>
      %146 = vector.shape_cast %145 : vector<8x128xf32> to vector<1x8x128xf32>
      %cst_67 = arith.constant dense<0.000000e+00> : vector<1xf32>
      %147 = vector.multi_reduction <add>, %146, %cst_67 [1, 2] : vector<1x8x128xf32> to vector<1xf32>
      %148 = vector.shape_cast %147 : vector<1xf32> to vector<1x1x1xf32>
      %149 = vector.extract %148[0, 0, 0] : f32 from vector<1x1x1xf32>
      %cst_68 = arith.constant 2.500000e-01 : f32
      %150 = arith.mulf %149, %cst_68 : f32
      %151 = tpu.iota {dimensions = array<i32: 1>} : vector<1x128xi32>
      %c0_i32_69 = arith.constant 0 : i32
      %152 = vector.broadcast %c0_i32_69 : i32 to vector<1x128xi32>
      %153 = arith.cmpi eq, %151, %152 : vector<1x128xi32>
      %c1_i32_70 = arith.constant 1 : i32
      %154 = vector.broadcast %c1_i32_70 : i32 to vector<1x128xi32>
      %155 = arith.cmpi eq, %151, %154 : vector<1x128xi32>
      %c2_i32_71 = arith.constant 2 : i32
      %156 = vector.broadcast %c2_i32_71 : i32 to vector<1x128xi32>
      %157 = arith.cmpi eq, %151, %156 : vector<1x128xi32>
      %cst_72 = arith.constant 0.000000e+00 : f32
      %158 = vector.broadcast %150 : f32 to vector<1x128xf32>
      %159 = vector.broadcast %cst_72 : f32 to vector<1x128xf32>
      %160 = arith.select %157, %158, %159 : vector<1x128xi1>, vector<1x128xf32>
      %161 = vector.broadcast %144 : f32 to vector<1x128xf32>
      %162 = arith.select %155, %161, %160 : vector<1x128xi1>, vector<1x128xf32>
      %163 = vector.broadcast %139 : f32 to vector<1x128xf32>
      %164 = arith.select %153, %163, %162 : vector<1x128xi1>, vector<1x128xf32>
      %c0_73 = arith.constant 0 : index
      %c0_74 = arith.constant 0 : index
      %165 = vector.load %arg7[%c0_73, %c0_74] : memref<1x128xf32, #tpu.memory_space<vmem>>, vector<1x128xf32>
      tpu.vector_store %arg7[%c0_73, %c0_74], %164 {strides = array<i32>} : memref<1x128xf32, #tpu.memory_space<vmem>>, vector<1x128xf32>,
    } else {
    }
    return
  }
  func.func @transform_0(%arg0: i32, %arg1: i32) -> (i32, i32) {
    %c1_i32 = arith.constant 1 : i32
    %0 = arith.muli %arg0, %c1_i32 : i32
    %1 = arith.addi %0, %arg1 : i32
    %c0_i32 = arith.constant 0 : i32
    %2 = arith.minsi %1, %c0_i32 : i32
    %c0_i32_0 = arith.constant 0 : i32
    %c0_i32_1 = arith.constant 0 : i32
    return %2, %c0_i32_0 : i32, i32
  }
  func.func @transform_1(%arg0: i32, %arg1: i32) -> (i32, i32) {
    %c1_i32 = arith.constant 1 : i32
    %0 = arith.muli %arg0, %c1_i32 : i32
    %1 = arith.addi %0, %arg1 : i32
    %c0_i32 = arith.constant 0 : i32
    %2 = arith.minsi %1, %c0_i32 : i32
    %c0_i32_0 = arith.constant 0 : i32
    %c0_i32_1 = arith.constant 0 : i32
    return %2, %c0_i32_0 : i32, i32
  }
  func.func @transform_2(%arg0: i32, %arg1: i32) -> (i32, i32) {
    %c1_i32 = arith.constant 1 : i32
    %0 = arith.muli %arg0, %c1_i32 : i32
    %1 = arith.addi %0, %arg1 : i32
    %c0_i32 = arith.constant 0 : i32
    %2 = arith.minsi %1, %c0_i32 : i32
    %c0_i32_0 = arith.constant 0 : i32
    %c0_i32_1 = arith.constant 0 : i32
    return %2, %c0_i32_0 : i32, i32
  }
  func.func @transform_3(%arg0: i32, %arg1: i32) -> (i32, i32) {
    %c1_i32 = arith.constant 1 : i32
    %0 = arith.muli %arg0, %c1_i32 : i32
    %1 = arith.addi %0, %arg1 : i32
    %c0_i32 = arith.constant 0 : i32
    %2 = arith.minsi %1, %c0_i32 : i32
    %c0_i32_0 = arith.constant 0 : i32
    %c0_i32_1 = arith.constant 0 : i32
    return %2, %c0_i32_0 : i32, i32
  }
  func.func @transform_4(%arg0: i32, %arg1: i32) -> (i32, i32) {
    %c1_i32 = arith.constant 1 : i32
    %0 = arith.muli %arg0, %c1_i32 : i32
    %1 = arith.addi %0, %arg1 : i32
    %c0_i32 = arith.constant 0 : i32
    %2 = arith.minsi %1, %c0_i32 : i32
    %c0_i32_0 = arith.constant 0 : i32
    %c0_i32_1 = arith.constant 0 : i32
    return %2, %c0_i32_0 : i32, i32
  }
  func.func @transform_5(%arg0: i32, %arg1: i32) -> (i32, i32) {
    %c0_i32 = arith.constant 0 : i32
    %c0_i32_0 = arith.constant 0 : i32
    return %arg0, %c0_i32 : i32, i32
  }
}

</mosaic_0001>

<bundles_post_ra>
// kernel: tpu_custom_call.1
= control target key start
LH: loop header
LB: loop body
LE: loop exit
PB: predicated region body
PF: predicated region fallthrough
CT: control target
= control target key end

     0   :  { %10 = vsyncpa [#allocation6], 0  ;;  %s565_s0 = inlined_call_operand.hbm [shape: f32[1,128], index: 0, kind: input, shape index: {}]   ;;  %s566_s1 = inlined_call_operand.hbm [shape: s8[1,128], index: 1, kind: input, shape index: {}]   ;;  %s567_s2 = inlined_call_operand.hbm [shape: f32[1,128], index: 2, kind: input, shape index: {}]   ;;  %s568_s3 = inlined_call_operand.hbm [shape: f32[1,128], index: 3, kind: input, shape index: {}]   ;;  %s569_s4 = inlined_call_operand.hbm [shape: s8[1,128], index: 4, kind: input, shape index: {}]   ;;  %s570_s5 = inlined_call_operand.hbm [shape: f32[1,128], index: 5, kind: output, shape index: {}]  }
   0x1   :  { %11 = vsyncpa [#allocation9], 0 }
   0x2   :  { %12 = vsyncpa [#allocation12], 0 }
   0x3   :  { %13 = vsyncpa [#allocation7], 0  ;;  %s442_s18 = smov [#allocation8]   ;;  %s443_s20 = smov [#allocation11]  }
   0x4   :  { %s40_s19 = sshll.u32 %s442_s18, 4  ;;  %s70_s21 = sshll.u32 %s443_s20, 4  ;;  %s41_s19 = int_to_ptr.vmem [resolvable:$true] %s40_s19  ;;  %s71_s21 = int_to_ptr.vmem [resolvable:$true] %s70_s21 }
   0x5   :  { %s302_s24 = scalar_lea.hbm %s566_s1, 16 }
   0x6   :  { %p303_p0 = scmp.ne.s32.totalorder %s566_s1, %s302_s24  ;;  %p306_p1 = scmp.lt.u32.totalorder %s302_s24, %s566_s1 }
   0x8   :  { %p308_p2 = pnand %p306_p1, %p303_p0 }
   0xa   :  { %311 = shalt.err (!%p308_p2)
}
   0xb   :  { %s312_s29 = scalar_lea.vmem %s41_s19, 16  ;;  %s316_s30 = scalar_lea.vmem %s41_s19, 32 }
   0xc   :  { %p313_p3 = scmp.ne.s32.totalorder %s41_s19, %s312_s29  ;;  %p317_p4 = scmp.lt.s32.totalorder %s41_s19, %s41_s19 }
   0xd   :  { %p318_p5 = scmp.lt.s32.totalorder %s316_s30, %s312_s29 }
   0xf   :  { %p319_p6 = por %p318_p5, %p317_p4 }
  0x11   :  { %p320_p7 = pnand %p319_p6, %p313_p3 }
  0x13   :  { %323 = shalt.err (!%p320_p7)
}
  0x14   :  { %43 = dma.hbm_to_vmem [thread:$0]  %s566_s1, 16, %s41_s19, [#allocation9]  }
  0x15   :  { %s324_s10 = scalar_lea.hbm %s568_s3, 16 }
  0x16   :  { %p325_p8 = scmp.ne.s32.totalorder %s568_s3, %s324_s10  ;;  %p328_p9 = scmp.lt.u32.totalorder %s324_s10, %s568_s3 }
  0x18   :  { %p330_p10 = pnand %p328_p9, %p325_p8 }
  0x1a   :  { %333 = shalt.err (!%p330_p10)
}
  0x1b   :  { %s334_s15 = scalar_lea.vmem %s71_s21, 16  ;;  %s338_s16 = scalar_lea.vmem %s71_s21, 32 }
  0x1c   :  { %p335_p11 = scmp.ne.s32.totalorder %s71_s21, %s334_s15  ;;  %p339_p12 = scmp.lt.s32.totalorder %s71_s21, %s71_s21 }
  0x1d   :  { %p340_p13 = scmp.lt.s32.totalorder %s338_s16, %s334_s15 }
  0x1f   :  { %p341_p0 = por %p340_p13, %p339_p12 }
  0x21   :  { %p342_p1 = pnand %p341_p0, %p335_p11 }
  0x23   :  { %345 = shalt.err (!%p342_p1)
}
  0x24   :  { %73 = dma.hbm_to_vmem [thread:$0]  %s568_s3, 16, %s71_s21, [#allocation12]  }
  0x25   :  { %s444_s18 = smov [#allocation5]   ;;  %s445_s20 = smov [#allocation10]  }
  0x26   :  { %s25_s19 = sshll.u32 %s444_s18, 4  ;;  %s55_s22 = sshll.u32 %s445_s20, 4  ;;  %s26_s19 = int_to_ptr.vmem [resolvable:$true] %s25_s19  ;;  %s56_s22 = int_to_ptr.vmem [resolvable:$true] %s55_s22 }
  0x27   :  { %s346_s25 = scalar_lea.hbm %s565_s0, 16 }
  0x28   :  { %p347_p2 = scmp.ne.s32.totalorder %s565_s0, %s346_s25  ;;  %p350_p3 = scmp.lt.u32.totalorder %s346_s25, %s565_s0 }
  0x2a   :  { %p352_p4 = pnand %p350_p3, %p347_p2 }
  0x2c   :  { %355 = shalt.err (!%p352_p4)
}
  0x2d   :  { %s356_s3 = scalar_lea.vmem %s26_s19, 16  ;;  %s360_s21 = scalar_lea.vmem %s26_s19, 32 }
  0x2e   :  { %p357_p5 = scmp.ne.s32.totalorder %s26_s19, %s356_s3  ;;  %p361_p6 = scmp.lt.s32.totalorder %s26_s19, %s26_s19 }
  0x2f   :  { %p362_p7 = scmp.lt.s32.totalorder %s360_s21, %s356_s3 }
  0x31   :  { %p363_p8 = por %p362_p7, %p361_p6 }
  0x33   :  { %p364_p9 = pnand %p363_p8, %p357_p5 }
  0x35   :  { %367 = shalt.err (!%p364_p9)
}
  0x36   :  { %28 = dma.hbm_to_vmem [thread:$0]  %s565_s0, 16, %s26_s19, [#allocation6]  }
  0x37   :  { %s368_s9 = scalar_lea.hbm %s567_s2, 16 }
  0x38   :  { %p369_p10 = scmp.ne.s32.totalorder %s567_s2, %s368_s9  ;;  %p372_p11 = scmp.lt.u32.totalorder %s368_s9, %s567_s2 }
  0x3a   :  { %p374_p12 = pnand %p372_p11, %p369_p10 }
  0x3c   :  { %377 = shalt.err (!%p374_p12)
}
  0x3d   :  { %s378_s14 = scalar_lea.vmem %s56_s22, 16  ;;  %s382_s15 = scalar_lea.vmem %s56_s22, 32 }
  0x3e   :  { %p379_p13 = scmp.ne.s32.totalorder %s56_s22, %s378_s14  ;;  %p383_p0 = scmp.lt.s32.totalorder %s56_s22, %s56_s22 }
  0x3f   :  { %p384_p1 = scmp.lt.s32.totalorder %s382_s15, %s378_s14 }
  0x41   :  { %p385_p2 = por %p384_p1, %p383_p0 }
  0x43   :  { %p386_p3 = pnand %p385_p2, %p379_p13 }
  0x45   :  { %389 = shalt.err (!%p386_p3)
}
  0x46   :  { %58 = dma.hbm_to_vmem [thread:$0]  %s567_s2, 16, %s56_s22, [#allocation9]  }
  0x47   :  { %s446_s1 = smov [#allocation13]   ;;  %s390_s20 = scalar_lea.hbm %s569_s4, 16 }
  0x48   :  { %s85_s17 = sshll.u32 %s446_s1, 4  ;;  %p391_p4 = scmp.ne.s32.totalorder %s569_s4, %s390_s20  ;;  %s86_s17 = int_to_ptr.vmem [resolvable:$true] %s85_s17 }
  0x49   :  { %p394_p5 = scmp.lt.u32.totalorder %s390_s20, %s569_s4 }
  0x4b   :  { %p396_p6 = pnand %p394_p5, %p391_p4 }
  0x4d   :  { %399 = shalt.err (!%p396_p6)
}
  0x4e   :  { %s400_s27 = scalar_lea.vmem %s86_s17, 16  ;;  %s404_s2 = scalar_lea.vmem %s86_s17, 32 }
  0x4f   :  { %p401_p7 = scmp.ne.s32.totalorder %s86_s17, %s400_s27  ;;  %p405_p8 = scmp.lt.s32.totalorder %s86_s17, %s86_s17 }
  0x50   :  { %p406_p9 = scmp.lt.s32.totalorder %s404_s2, %s400_s27 }
  0x52   :  { %p407_p10 = por %p406_p9, %p405_p8 }
  0x54   :  { %p408_p11 = pnand %p407_p10, %p401_p7 }
  0x56   :  { %411 = shalt.err (!%p408_p11)
}
  0x57   :  { %88 = dma.hbm_to_vmem [thread:$0]  %s569_s4, 16, %s86_s17, [#allocation12]  }
  0x58   :  { %434 = dma.done.wait [#allocation6], 16  }
  0x59   :  { %435 = vsyncadd [#allocation6], 4294967280 }
  0x5a   :  { %436 = dma.done.wait [#allocation9], 32  }
  0x5b   :  { %437 = vsyncadd [#allocation9], 4294967264 }
  0x5c   :  { %438 = dma.done.wait [#allocation12], 32  }
  0x5d   :  { %439 = vsyncadd [#allocation12], 4294967264  ;;  %v128_v0 = vlaneseq  ;;  %v447_v1 = vmov 0.0   ;;  %v187_v7 = vld [vmem:[#allocation13] sm:$0x1]  ;;  %s448_s30 = smov [#allocation14]  }
  0x5e   :  { %123 = vst [vmem:[#allocation2] sm:$0xff] %v447_v1  ;;  %124 = vst [vmem:[#allocation3] sm:$0xff] %v447_v1  ;;  %v192_v8 = vld [vmem:[#allocation10] sm:$0x1]  ;;  %v193_v9 = vld [vmem:[#allocation11] sm:$0x1]  ;;  %v188_v10 = vunpack.c.0.s8 %v187_v7 }
  0x5f   :  { %125 = vst [vmem:[#allocation4] sm:$0xff] %v447_v1  ;;  %v539_v2 = vand.u32 127, %v128_v0  ;;  %v131_v3 = vshrl.u32 %v128_v0, 7  ;;  %v194_v11 = vsub.f32 %v192_v8, %v193_v9  ;;  %v143_v12 = vld [vmem:[#allocation5] sm:$0x1]  ;;  %s261_s6 = sshll.u32 %s448_s30, 4  ;;  %s262_s6 = int_to_ptr.vmem [resolvable:$true] %s261_s6 }
  0x60   :  { %v189_v13 = vcvt.s32.f32 %v188_v10  ;;  %v147_v16 = vand.u32 2147483647, %v143_v12  ;;  %v144_v32 = vld [vmem:[#allocation8] sm:$0x1]  ;;  %v156_v34 = vsub.f32 0.0, %v143_v12  ;;  %v154_v36 = vmax.f32 %v143_v12, 0.0  ;;  %p417_p13 = scmp.lt.s32.totalorder %s262_s6, %s262_s6 }
  0x61   :  { %v133_v4 = vmul.u32 32, %v131_v3  ;;  %v136_v5 = vshra.s32 %v539_v2, 2  ;;  %v195_v14 = vand.u32 2147483647, %v194_v11  ;;  %v197_v15 = vmul.f32 0.5, %v194_v11  ;;  %s412_s7 = scalar_lea.vmem %s262_s6, 16 }
  0x62   :  { %vm190_vm1 = vcmp.gt.f32.partialorder %v189_v13, 0.5  ;;  %v148_v21 = vsub.f32 0.0, %v147_v16  ;;  %v145_v33 = vunpack.c.0.s8 %v144_v32  ;;  %v157_v37 = vmax.f32 %v156_v34, 0.0  ;;  %p413_p12 = scmp.ne.s32.totalorder %s262_s6, %s412_s7  ;;  %s416_s8 = scalar_lea.vmem %s262_s6, 32 }
  0x63   :  { %v542_v6 = vadd.s32 %v136_v5, %v133_v4  ;;  %vm196_vm2 = vcmp.lt.f32.partialorder %v195_v14, 1.0  ;;  %v198_v17 = vmul.f32 %v197_v15, %v194_v11  ;;  %v282_v18 = vadd.f32 -0.5, %v195_v14  ;;  %p418_p0 = scmp.lt.s32.totalorder %s416_s8, %s412_s7 }
  0x64   :  { %v149_v26 = vmul.f32 1.442695, %v148_v21  ;;  %v146_v35 = vcvt.s32.f32 %v145_v33  ;;  %vm164_vm4 = vcmp.ge.f32.partialorder %v143_v12, 0.0  ;;  %v132_v55 = vand.u32 3, %v539_v2 }
  0x65   :  { %vm141_vm0 = vcmp.lt.s32.totalorder %v542_v6, 32  ;;  %v203_v20 = vld [vmem:[#allocation2] sm:$0x1]  ;;  %v200_v22 = vsel %vm196_vm2, %v198_v17, %v282_v18  ;;  %vm247_vm7 = vcmp.eq.s32.totalorder %v539_v2, 2  ;;  %vm246_vm8 = vcmp.eq.s32.totalorder %v539_v2, 1  ;;  %p419_p1 = por %p418_p0, %p417_p13 }
  0x66   :  { %v208_v19 = vld [vmem:[#allocation4] sm:$0x1]  ;;  %vm191_vm3 = vmand %vm141_vm0, %vm190_vm1  ;;  %296 = vpow2.f32 %v149_v26  ;;  %v168_v41 = vsub.f32 1.0, %v146_v35  ;;  %v167_v46 = vmul.f32 0.25, %v146_v35  ;;  %vm138_vm5 = vcmp.ge.s32.totalorder %v132_v55, 1 }
  0x67   :  { %v206_v23 = vsel %vm191_vm3, 1.0, %v447_v1  ;;  %v201_v24 = vsel %vm191_vm3, %v200_v22, 0.0  ;;  %vm142_vm6 = vmand %vm138_vm5, %vm141_vm0  ;;  %v184_v1 = vld [vmem:[#allocation3] sm:$0x1]  ;;  %vm245_vm9 = vcmp.eq.s32.totalorder %v539_v2, 0  ;;  %p420_p2 = pnand %p419_p1, %p413_p12 }
  0x68   :  { %v209_v25 = vadd.f32 %v208_v19, %v206_v23  ;;  %v204_v27 = vadd.f32 %v203_v20, %v201_v24  ;;  %v169_v47 = vmul.f32 0.75, %v168_v41 }
  0x6a   :  { %210 = vst [vmem:[#allocation4] sm:$0x1] %v209_v25  ;;  %205 = vst [vmem:[#allocation2] sm:$0x1] %v204_v27  ;;  %v170_v56 = vadd.f32 %v169_v47, %v167_v46 }
  0x70   :  { %v297_v30 = vpop.eup %296 }
  0x71   :  { %v234_v28 = vld [vmem:[#allocation4] sm:$0xff]  ;;  %v214_v29 = vld [vmem:[#allocation2] sm:$0xff]  ;;  %v151_v31 = vadd.f32 1.0, %v297_v30 }
  0x72   :  { %235 = vadd.xlane.f32.xlu1 %v234_v28  ;;  %215 = vadd.xlane.f32.xlu0 %v214_v29 }
  0x73   :  { %298 = vlog2.f32 %v151_v31 }
  0x74   :  { %300 = vrcp.f32 %v151_v31 }
  0x7d   :  { %v299_v38 = vpop.eup %298 }
  0x7e   :  { %v301_v39 = vpop.eup %300  ;;  %v153_v40 = vmul.f32 0.6931472, %v299_v38 }
  0x7f   :  { %v165_v42 = vmul.f32 %v301_v39, %v297_v30 }
  0x80   :  { %v155_v43 = vadd.f32 %v154_v36, %v153_v40  ;;  %v158_v44 = vadd.f32 %v157_v37, %v153_v40 }
  0x81   :  { %v166_v45 = vsel %vm164_vm4, %v301_v39, %v165_v42 }
  0x82   :  { %v159_v48 = vsub.f32 0.0, %v158_v44  ;;  %v161_v49 = vsub.f32 0.0, %v155_v43  ;;  %v171_v50 = vmul.f32 %v166_v45, %v146_v35  ;;  %v173_v51 = vmul.f32 %v168_v41, %v166_v45 }
  0x84   :  { %v160_v52 = vmax.f32 %v159_v48, -100.0  ;;  %v162_v53 = vmax.f32 %v161_v49, -100.0  ;;  %v172_v54 = vsub.f32 1.0, %v171_v50 }
  0x86   :  { %v174_v57 = vadd.f32 %v173_v51, %v172_v54  ;;  %v178_v58 = vmul.f32 %v160_v52, %v146_v35  ;;  %v179_v59 = vmul.f32 %v168_v41, %v162_v53 }
  0x88   :  { %v175_v60 = vmul.f32 %v174_v57, %v174_v57  ;;  %v180_v62 = vadd.f32 %v179_v59, %v178_v58 }
  0x8a   :  { %v176_v61 = vmul.f32 %v175_v60, %v170_v56 }
  0x8c   :  { %v177_v63 = vsub.f32 0.0, %v176_v61 }
  0x8e   :  { %v181_v0 = vmul.f32 %v180_v62, %v177_v63 }
  0x90   :  { %v182_v3 = vsel %vm142_vm6, %v181_v0, 0.0 }
  0x91   :  { %v185_v4 = vadd.f32 %v184_v1, %v182_v3 }
  0x93   :  { %186 = vst [vmem:[#allocation3] sm:$0x1] %v185_v4 }
  0x9a   :  { %v224_v5 = vld [vmem:[#allocation3] sm:$0xff] }
  0x9b   :  { %225 = vadd.xlane.f32.xlu0 %v224_v5 }
  0xff   :  { %v216_v7 = vpop.xlane.xlu0 %215  ;;  %v236_v14 = vpop.xlane.xlu1 %235 }
 0x100   :  { %v217_v8 = vrot.slane %v216_v7, 4  ;;  %v237_v15 = vrot.slane %v236_v14, 4 }
 0x102   :  { %v218_v9 = vadd.f32 %v217_v8, %v216_v7  ;;  %v238_v16 = vadd.f32 %v237_v15, %v236_v14 }
 0x104   :  { %v219_v10 = vrot.slane %v218_v9, 2  ;;  %v239_v6 = vrot.slane %v238_v16, 2 }
 0x106   :  { %v220_v11 = vadd.f32 %v219_v10, %v218_v9  ;;  %v240_v20 = vadd.f32 %v239_v6, %v238_v16 }
 0x108   :  { %v221_v12 = vrot.slane %v220_v11, 1  ;;  %v241_v23 = vrot.slane %v240_v20, 1 }
 0x10a   :  { %v222_v13 = vadd.f32 %v221_v12, %v220_v11  ;;  %v242_v26 = vadd.f32 %v241_v23, %v240_v20 }
 0x10c   :  { %283 = vpush %v222_v13 }
 0x128   :  { %v226_v17 = vpop.xlane.xlu0 %225 }
 0x129   :  { %v227_v18 = vrot.slane %v226_v17, 4 }
 0x12b   :  { %v228_v19 = vadd.f32 %v227_v18, %v226_v17 }
 0x12d   :  { %v229_v21 = vrot.slane %v228_v19, 2 }
 0x12f   :  { %v230_v22 = vadd.f32 %v229_v21, %v228_v19 }
 0x131   :  { %v231_v24 = vrot.slane %v230_v22, 1 }
 0x133   :  { %v232_v25 = vadd.f32 %v231_v24, %v230_v22 }
 0x135   :  { %285 = vpush %v232_v25 }
 0x136   :  { %287 = vpush %v242_v26 }
 0x13d   :  { %s284_s4 = spop %283 }
 0x13e   :  { %v252_v30 = vstv %s284_s4 }
 0x166   :  { %s286_s29 = spop %285 }
 0x167   :  { %s288_s3 = spop %287  ;;  %v250_v28 = vstv %s286_s29 }
 0x168   :  { %s244_s21 = smul.f32 0.25, %s288_s3 }
 0x16a   :  { %v248_v27 = vstv %s244_s21 }
 0x16b   :  { %v249_v29 = vsel %vm247_vm7, %v248_v27, 0.0 }
 0x16c   :  { %v251_v31 = vsel %vm246_vm8, %v250_v28, %v249_v29 }
 0x16d   :  { %v253_v32 = vsel %vm245_vm9, %v252_v30, %v251_v31 }
 0x16e   :  { %254 = vst [vmem:[#allocation14] sm:$0x1] %v253_v32 }
 0x16f   :  { %423 = shalt.err (!%p420_p2)
}
 0x170   :  { %s424_s11 = scalar_lea.hbm %s570_s5, 16 }
 0x171   :  { %p425_p3 = scmp.ne.s32.totalorder %s570_s5, %s424_s11  ;;  %p428_p4 = scmp.lt.u32.totalorder %s424_s11, %s570_s5 }
 0x173   :  { %p430_p5 = pnand %p428_p4, %p425_p3 }
 0x175   :  { %433 = shalt.err (!%p430_p5)
}
 0x176   :  { %264 = dma.vmem_to_hbm [thread:$0]  %s262_s6, 16, %s570_s5, [#allocation7]  }
 0x177   :  { %440 = dma.done.wait [#allocation7], 16  }
 0x178   :  { %441 = vsyncadd [#allocation7], 4294967280 }
 0x179   :  { %268 = vsyncpa [#allocation6], 1 }
 0x17a   :  { %269 = vsyncpa [#allocation9], 1 }
 0x17b   :  { %270 = vsyncpa [#allocation12], 1 }
 0x17c   :  { %271 = vsyncpa [#allocation7], 1 }

</bundles_post_ra>
